<compile_context>
chip_gen: v7x
topology: tpu7x:2x2x1
jax: 0.10.0
libtpu: 0.0.40
codegen_flags: <defaults>
</compile_context>

<pallas_src>
import functools

import jax
import jax.numpy as jnp
from jax.experimental import pallas as pl
from jax.experimental.pallas import tpu as pltpu


def _normalize_kernel(x_ref, o_ref, *, power: int, eps: float):
    # Block shape: (n_tile, C, s_tile, 128); channel reduction is axis=1.
    x_src = x_ref[...]
    xf = x_src.astype(jnp.float32)
    if power == 2:
        s = jnp.sum(xf * xf, axis=1, keepdims=True)     # VPU adds across C vregs
        if eps > 0.0:
            s = jnp.maximum(s, eps)
        inv = jax.lax.rsqrt(s)                          # EUP, own VLIW slot
    else:
        # Matches the PyTorch module exactly: sum(x**p)**(1/p), no abs().
        # (Odd p with negative activations -> NaN, same as the reference.)
        s = jnp.sum(xf ** power, axis=1, keepdims=True)
        if eps > 0.0:
            s = jnp.maximum(s, eps)
        inv = jnp.power(s, -1.0 / power)

    if x_src.dtype == jnp.float32 or not jnp.issubdtype(x_src.dtype, jnp.floating):
        o_ref[...] = (xf * inv).astype(o_ref.dtype)
    else:
        # Sub-32-bit floats: multiply in the source dtype so the f32 upcast of
        # the whole block is only live through the reduction (halves internal
        # VMEM scratch pressure, which is what lets the 4 MiB blocks fit).
        o_ref[...] = x_src * inv.astype(x_src.dtype)


def _pick_spatial_tile(R, C, itemsize, target_bytes, granule):
    """Largest sublane tile (multiple of `granule`, or == R) with one block of
    roughly `target_bytes`.  Partial tail blocks are fine (grid uses cdiv and
    stores are masked), so never shrink far below the target chasing an exact
    divisor of R."""
    if R <= granule:
        return R
    max_rows = max(granule, target_bytes // (C * 128 * itemsize))
    tile = max(granule, min(R, (max_rows // granule) * granule))
    if tile >= R:
        return R
    # Prefer an exact divisor of R, but never drop below half the target tile.
    t = tile
    while t > granule and R % t != 0 and t > tile // 2:
        t -= granule
    return t if R % t == 0 else tile


_TARGET_BLOCK_BYTES = 4 << 20          # ~4 MiB blocks: good on v5e/v6e/v7x
_VMEM_LIMIT_BYTES = 48 * 1024 * 1024   # headroom under v7x's 64 MiB physical VMEM


def normalize(x: jax.Array, power: int = 2, eps: float = 0.0) -> jax.Array:
    """Pallas TPU Normalize.forward: x / (sum_c x**p)**(1/p).

    eps=0.0 reproduces the PyTorch module exactly (no zero-norm clamp). A
    nonzero eps clamps the p-th-power channel sum, i.e. the effective norm
    clamp is eps**(1/p) (slightly different from F.normalize's clamp_min on
    the norm itself).
    """
    N, C, H, W = x.shape
    HW = H * W
    itemsize = jnp.dtype(x.dtype).itemsize
    kernel = functools.partial(_normalize_kernel, power=power, eps=eps)

    # Lane-dense (N, C, R, 128) view; pad the flattened spatial dim to a
    # multiple of 128 if needed so every shape takes the same fast path.
    R = -(-HW // 128)
    HW_pad = R * 128
    if HW_pad != HW:
        x_r = jnp.pad(x.reshape(N, C, HW),
                      ((0, 0), (0, 0), (0, HW_pad - HW))).reshape(N, C, R, 128)
    else:
        x_r = x.reshape(N, C, R, 128)

    granule = max(8, 8 * (4 // itemsize))   # 8 f32 / 16 bf16 / 32 int8,fp8
    s_tile = _pick_spatial_tile(R, C, itemsize, _TARGET_BLOCK_BYTES, granule)

    blk_bytes = C * s_tile * 128 * itemsize
    n_tile = 1
    if s_tile == R:
        # Batch several N per grid step up to the block byte budget ...
        n_tile = int(max(1, min(N, _TARGET_BLOCK_BYTES // max(1, blk_bytes))))
        # ... but keep >= 2 grid steps for non-trivial tensors so both of
        # v7x's TensorCores get work.
        if N * blk_bytes > (1 << 20):
            n_tile = min(n_tile, max(1, N // 2))

    grid = (pl.cdiv(N, n_tile), pl.cdiv(R, s_tile))
    out = pl.pallas_call(
        kernel,
        out_shape=jax.ShapeDtypeStruct((N, C, R, 128), x.dtype),
        grid_spec=pltpu.PrefetchScalarGridSpec(
            num_scalar_prefetch=0,
            grid=grid,
            in_specs=[pl.BlockSpec((n_tile, C, s_tile, 128),
                                   lambda n, s: (n, 0, s, 0))],
            out_specs=pl.BlockSpec((n_tile, C, s_tile, 128),
                                   lambda n, s: (n, 0, s, 0)),
        ),
        compiler_params=pltpu.CompilerParams(
            dimension_semantics=("parallel", "parallel"),
            vmem_limit_bytes=_VMEM_LIMIT_BYTES,
        ),
        # NOTE: pass input_output_aliases={0: 0} if the caller can donate x
        # (removes one HBM allocation); pipeline_mode=pl.Buffered(3) on the
        # input spec is a possible <5% tail win -- measure before committing.
    )(x_r)

    if HW_pad != HW:
        out = out.reshape(N, C, HW_pad)[:, :, :HW]
    return out.reshape(N, C, H, W)


def _reference(x, power=2):
    norm = jnp.power(jnp.sum(jnp.power(x, power), axis=1, keepdims=True),
                     1.0 / power)
    return x / norm


if __name__ == "__main__":
    # Lane-aligned shape (H*W % 128 == 0).
    x = jax.random.normal(jax.random.PRNGKey(0), (2, 4, 16, 16),
                          dtype=jnp.float32)
    out = jax.block_until_ready(normalize(x, power=2))
    ref = _reference(x, power=2)
    assert out.shape == x.shape and out.dtype == x.dtype
    assert jnp.allclose(out, ref, atol=1e-5, rtol=1e-5)

    # Non-aligned shape exercises the pad-to-128 path.
    x2 = jax.random.normal(jax.random.PRNGKey(1), (2, 4, 15, 15),
                           dtype=jnp.float32)
    out2 = jax.block_until_ready(normalize(x2, power=2))
    ref2 = _reference(x2, power=2)
    assert out2.shape == x2.shape and out2.dtype == x2.dtype
    assert jnp.allclose(out2, ref2, atol=1e-5, rtol=1e-5)

    print("KERNEL_OK")
</pallas_src>

<mosaic_0001>
module attributes {stable_mosaic.version = 11 : i64} {
  func.func @_normalize_kernel(%arg0: i32, %arg1: i32, %arg2: memref<2x4x2x128xf32, #tpu.memory_space<vmem>>, %arg3: memref<2x4x2x128xf32, #tpu.memory_space<vmem>>) attributes {dimension_semantics = [#tpu.dimension_semantics<parallel>, #tpu.dimension_semantics<parallel>], iteration_bounds = array<i64: 1, 1>, scalar_prefetch = 0 : i64, scratch_operands = 0 : i64, tpu.core_type = #tpu.core_type<tc>, window_params = [{transform_indices = @transform_0, window_bounds = array<i64: 2, 4, 2, 128>}, {transform_indices = @transform_1, window_bounds = array<i64: 2, 4, 2, 128>}]} {
    %c0 = arith.constant 0 : index
    %c0_0 = arith.constant 0 : index
    %c0_1 = arith.constant 0 : index
    %c0_2 = arith.constant 0 : index
    %0 = vector.load %arg2[%c0, %c0_0, %c0_1, %c0_2] : memref<2x4x2x128xf32, #tpu.memory_space<vmem>>, vector<2x4x2x128xf32>
    %1 = arith.mulf %0, %0 : vector<2x4x2x128xf32>
    %cst = arith.constant dense<0.000000e+00> : vector<2x2x128xf32>
    %2 = vector.multi_reduction <add>, %1, %cst [1] : vector<2x4x2x128xf32> to vector<2x2x128xf32>
    %3 = vector.shape_cast %2 : vector<2x2x128xf32> to vector<2x1x2x128xf32>
    %4 = math.rsqrt %3 : vector<2x1x2x128xf32>
    %5 = vector.broadcast %4 : vector<2x1x2x128xf32> to vector<2x4x2x128xf32>
    %6 = arith.mulf %0, %5 : vector<2x4x2x128xf32>
    %c0_3 = arith.constant 0 : index
    %c0_4 = arith.constant 0 : index
    %c0_5 = arith.constant 0 : index
    %c0_6 = arith.constant 0 : index
    %7 = vector.load %arg3[%c0_3, %c0_4, %c0_5, %c0_6] : memref<2x4x2x128xf32, #tpu.memory_space<vmem>>, vector<2x4x2x128xf32>
    tpu.vector_store %arg3[%c0_3, %c0_4, %c0_5, %c0_6], %6 {strides = array<i32>} : memref<2x4x2x128xf32, #tpu.memory_space<vmem>>, vector<2x4x2x128xf32>,
    return
  }
  func.func @transform_0(%arg0: i32, %arg1: i32) -> (i32, i32, i32, i32) {
    %c0_i32 = arith.constant 0 : i32
    %c0_i32_0 = arith.constant 0 : i32
    %c0_i32_1 = arith.constant 0 : i32
    return %arg0, %c0_i32, %arg1, %c0_i32_0 : i32, i32, i32, i32
  }
  func.func @transform_1(%arg0: i32, %arg1: i32) -> (i32, i32, i32, i32) {
    %c0_i32 = arith.constant 0 : i32
    %c0_i32_0 = arith.constant 0 : i32
    %c0_i32_1 = arith.constant 0 : i32
    return %arg0, %c0_i32, %arg1, %c0_i32_0 : i32, i32, i32, i32
  }
}

</mosaic_0001>

<bundles_post_ra>
// kernel: tpu_custom_call.1
= control target key start
LH: loop header
LB: loop body
LE: loop exit
PB: predicated region body
PF: predicated region fallthrough
CT: control target
= control target key end

     0   :  { %6 = vsyncpa [#allocation3], 0  ;;  %s197_s0 = inlined_call_operand.hbm [shape: f32[2,4,2,128], index: 0, kind: input, shape index: {}]   ;;  %s198_s1 = inlined_call_operand.hbm [shape: f32[2,4,2,128], index: 1, kind: output, shape index: {}]  }
   0x1   :  { %7 = vsyncpa [#allocation4], 0  ;;  %s145_s6 = smov [#allocation2]   ;;  %s97_s10 = scalar_lea.hbm %s197_s0, 256 }
   0x2   :  { %s13_s7 = sshll.u32 %s145_s6, 4  ;;  %p98_p0 = scmp.ne.s32.totalorder %s197_s0, %s97_s10  ;;  %s14_s7 = int_to_ptr.vmem [resolvable:$true] %s13_s7 }
   0x3   :  { %p101_p1 = scmp.lt.u32.totalorder %s97_s10, %s197_s0 }
   0x5   :  { %p103_p2 = pnand %p101_p1, %p98_p0 }
   0x7   :  { %106 = shalt.err (!%p103_p2)
}
   0x8   :  { %s107_s15 = scalar_lea.vmem %s14_s7, 256  ;;  %p112_p4 = scmp.lt.s32.totalorder %s14_s7, %s14_s7 }
   0x9   :  { %p108_p3 = scmp.ne.s32.totalorder %s14_s7, %s107_s15  ;;  %p113_p5 = scmp.lt.s32.totalorder %s107_s15, %s107_s15 }
   0xb   :  { %p114_p6 = por %p113_p5, %p112_p4 }
   0xd   :  { %p115_p7 = pnand %p114_p6, %p108_p3 }
   0xf   :  { %118 = shalt.err (!%p115_p7)
}
  0x10   :  { %s146_s16 = smov 32   ;;  %s147_s17 = smov 2  }
  0x11   :  { %19 = dma.hbm_to_vmem [thread:$0]  %s197_s0, 256, %s14_s7, [#allocation3], %s146_s16, %s146_s16, %s147_s17  }
  0x12   :  { %141 = dma.done.wait [#allocation3], 256  }
  0x13   :  { %142 = vsyncadd [#allocation3], 4294967040  ;;  %vm39_vm0 = vcmask 1041408   ;;  %v23_v0 = vld [vmem:[#allocation2] sm:$0x3]  ;;  %s148_s0 = smov [#allocation5]  }
  0x14   :  { %v24_v1 = vld [vmem:[#allocation2 + $0x2] sm:$0x3]  ;;  %v25_v2 = vld [vmem:[#allocation2 + $0x4] sm:$0x3]  ;;  %v26_v3 = vld [vmem:[#allocation2 + $0x6] sm:$0x3]  ;;  %v31_v4 = vmul.f32 %v23_v0, %v23_v0 }
  0x15   :  { %v32_v5 = vmul.f32 %v24_v1, %v24_v1  ;;  %v33_v6 = vmul.f32 %v25_v2, %v25_v2  ;;  %v27_v7 = vld [vmem:[#allocation2 + $0x8] sm:$0x3]  ;;  %v28_v8 = vld [vmem:[#allocation2 + $0xa] sm:$0x3]  ;;  %v34_v9 = vmul.f32 %v26_v3, %v26_v3  ;;  %v29_v10 = vld [vmem:[#allocation2 + $0xc] sm:$0x3] }
  0x16   :  { %v30_v11 = vld [vmem:[#allocation2 + $0xe] sm:$0x3]  ;;  %v35_v12 = vmul.f32 %v27_v7, %v27_v7  ;;  %v36_v13 = vmul.f32 %v28_v8, %v28_v8  ;;  %v40_v14 = vsel %vm39_vm0, %v31_v4, 0.0  ;;  %v37_v17 = vmul.f32 %v29_v10, %v29_v10  ;;  %s77_s20 = sshll.u32 %s148_s0, 4  ;;  %s78_s20 = int_to_ptr.vmem [resolvable:$true] %s77_s20 }
  0x17   :  { %v41_v15 = vsel %vm39_vm0, %v32_v5, 0.0  ;;  %v43_v16 = vsel %vm39_vm0, %v33_v6, 0.0  ;;  %v38_v19 = vmul.f32 %v30_v11, %v30_v11  ;;  %v45_v21 = vsel %vm39_vm0, %v34_v9, 0.0  ;;  %s119_s21 = scalar_lea.vmem %s78_s20, 256  ;;  %p124_p9 = scmp.lt.s32.totalorder %s78_s20, %s78_s20 }
  0x18   :  { %v42_v18 = vadd.f32 %v41_v15, %v40_v14  ;;  %v47_v20 = vsel %vm39_vm0, %v35_v12, 0.0  ;;  %v48_v22 = vsel %vm39_vm0, %v36_v13, 0.0  ;;  %v50_v23 = vsel %vm39_vm0, %v37_v17, 0.0  ;;  %p120_p8 = scmp.ne.s32.totalorder %s78_s20, %s119_s21  ;;  %p125_p10 = scmp.lt.s32.totalorder %s119_s21, %s119_s21 }
  0x19   :  { %v49_v25 = vadd.f32 %v48_v22, %v47_v20  ;;  %v52_v26 = vsel %vm39_vm0, %v38_v19, 0.0 }
  0x1a   :  { %v44_v24 = vadd.f32 %v43_v16, %v42_v18  ;;  %p126_p11 = por %p125_p10, %p124_p9 }
  0x1b   :  { %v51_v28 = vadd.f32 %v50_v23, %v49_v25 }
  0x1c   :  { %v46_v27 = vadd.f32 %v45_v21, %v44_v24  ;;  %p127_p12 = pnand %p126_p11, %p120_p8 }
  0x1d   :  { %v53_v29 = vadd.f32 %v52_v26, %v51_v28 }
  0x1e   :  { %93 = vrsqrt.f32 %v46_v27 }
  0x1f   :  { %95 = vrsqrt.f32 %v53_v29 }
  0x28   :  { %v94_v30 = vpop.eup %93 }
  0x29   :  { %v56_v31 = vmul.f32 %v94_v30, %v23_v0  ;;  %v57_v32 = vmul.f32 %v94_v30, %v24_v1  ;;  %v58_v33 = vmul.f32 %v94_v30, %v25_v2  ;;  %v59_v34 = vmul.f32 %v94_v30, %v26_v3  ;;  %v96_v35 = vpop.eup %95 }
  0x2a   :  { %v60_v36 = vmul.f32 %v96_v35, %v27_v7  ;;  %v61_v37 = vmul.f32 %v96_v35, %v28_v8  ;;  %v62_v38 = vmul.f32 %v96_v35, %v29_v10  ;;  %v63_v39 = vmul.f32 %v96_v35, %v30_v11 }
  0x2b   :  { %64 = vst [vmem:[#allocation5] sm:$0x3] %v56_v31  ;;  %65 = vst [vmem:[#allocation5 + $0x2] sm:$0x3] %v57_v32 }
  0x2c   :  { %66 = vst [vmem:[#allocation5 + $0x4] sm:$0x3] %v58_v33  ;;  %67 = vst [vmem:[#allocation5 + $0x6] sm:$0x3] %v59_v34 }
  0x2d   :  { %68 = vst [vmem:[#allocation5 + $0x8] sm:$0x3] %v60_v36  ;;  %69 = vst [vmem:[#allocation5 + $0xa] sm:$0x3] %v61_v37 }
  0x2e   :  { %70 = vst [vmem:[#allocation5 + $0xc] sm:$0x3] %v62_v38  ;;  %71 = vst [vmem:[#allocation5 + $0xe] sm:$0x3] %v63_v39 }
  0x2f   :  { %130 = shalt.err (!%p127_p12)
}
  0x30   :  { %s131_s24 = scalar_lea.hbm %s198_s1, 256 }
  0x31   :  { %p132_p13 = scmp.ne.s32.totalorder %s198_s1, %s131_s24  ;;  %p135_p0 = scmp.lt.u32.totalorder %s131_s24, %s198_s1 }
  0x33   :  { %p137_p1 = pnand %p135_p0, %p132_p13 }
  0x35   :  { %140 = shalt.err (!%p137_p1)
}
  0x36   :  { %83 = dma.vmem_to_hbm [thread:$0]  %s78_s20, 256, %s198_s1, [#allocation4], %s146_s16, %s146_s16, %s147_s17  }
  0x37   :  { %143 = dma.done.wait [#allocation4], 256  }
  0x38   :  { %144 = vsyncadd [#allocation4], 4294967040 }
  0x39   :  { %87 = vsyncpa [#allocation3], 1 }
  0x3a   :  { %88 = vsyncpa [#allocation4], 1 }

</bundles_post_ra>
